<compile_context>
chip_gen: v7x
topology: tpu7x:2x2x1
jax: 0.10.0
libtpu: 0.0.40
codegen_flags: <defaults>
</compile_context>

<pallas_src>
import jax
import jax.numpy as jnp
from jax.experimental import pallas as pl
from jax.experimental.pallas import tpu as pltpu


def _round_up(a: int, b: int) -> int:
    return (a + b - 1) // b * b


def _vmem_capacity_bytes() -> int:
    """Physical VMEM per core; conservative 64 MiB (v7x) fallback."""
    try:
        info = pltpu.get_tpu_info()
        for name in ("vmem_capacity_bytes", "vmem_size_bytes", "vmem_bytes"):
            v = getattr(info, name, None)
            if v:
                return int(v)
    except Exception:
        pass
    return 64 << 20


def _make_kernel(has_bias: bool, single_k_step: bool, compute_dtype):
    if single_k_step:
        # K fits one tile: no accumulator scratch, no zero-init, no revisit.
        def kernel(x_ref, w_ref, s_ref, *rest):
            if has_bias:
                b_ref, o_ref = rest
            else:
                (o_ref,) = rest
                b_ref = None
            # int8 -> bf16 cast is exact; activation cast happens here if the
            # wrapper passed f32 (single-read case).
            acc = jnp.dot(x_ref[...].astype(compute_dtype),
                          w_ref[...].astype(compute_dtype),
                          preferred_element_type=jnp.float32)
            out = acc * s_ref[...]
            if has_bias:
                out = out + b_ref[...]
            o_ref[...] = out.astype(o_ref.dtype)
        return kernel

    def kernel(x_ref, w_ref, s_ref, *rest):
        if has_bias:
            b_ref, o_ref, acc_ref = rest
        else:
            o_ref, acc_ref = rest
            b_ref = None

        k = pl.program_id(2)  # K is the innermost "arbitrary" reduction axis

        @pl.when(k == 0)
        def _():
            acc_ref[...] = jnp.zeros_like(acc_ref)

        # Standard k-major contraction: (tm, tk) x (tk, tn), MXU-native, no transpose.
        acc_ref[...] += jnp.dot(x_ref[...].astype(compute_dtype),
                                w_ref[...].astype(compute_dtype),
                                preferred_element_type=jnp.float32)

        @pl.when(k == pl.num_programs(2) - 1)
        def _():
            out = acc_ref[...] * s_ref[...]          # per-out-channel scale (f32)
            if has_bias:
                out = out + b_ref[...]
            o_ref[...] = out.astype(o_ref.dtype)

    return kernel


class W8A16Linear:
    """One-time-prepared W8A16 linear: out = (x @ W_int8.T) * scales (+ bias).

    All static-parameter work (pad to tile multiples, (N,K)->(K,N) transpose,
    scale/bias padding) happens once in __init__, never in the per-call path.
    """

    def __init__(self, int8_weights, scales, bias=None, *,
                 compute_dtype=jnp.bfloat16, tm=256, tn=1024, tk=4096):
        int8_weights = jnp.asarray(int8_weights, dtype=jnp.int8)
        N, K = int8_weights.shape
        self.N, self.K = N, K
        self.compute_dtype = compute_dtype
        self.has_bias = bias is not None

        # Lane-/MXU-friendly tiles, clamped to the (128-padded) problem dims.
        self.tm = tm
        self.tn = min(tn, _round_up(N, 128))
        self.tk = min(tk, _round_up(K, 128))
        self.Np = _round_up(N, self.tn)
        self.Kp = _round_up(K, self.tk)

        # One-time pad + transpose to (Kp, Np): the kernel streams k-major int8
        # weight tiles directly into the MXU (no per-step transpose on any gen).
        w = int8_weights
        if (self.Np, self.Kp) != (N, K):
            w = jnp.pad(w, ((0, self.Np - N), (0, self.Kp - K)))
        self.w_t = jax.block_until_ready(jnp.transpose(w))            # (Kp, Np) int8

        s = jnp.asarray(scales, dtype=jnp.float32).reshape(1, N)
        if self.Np != N:
            s = jnp.pad(s, ((0, 0), (0, self.Np - N)))
        self.scales = jax.block_until_ready(s)                        # (1, Np) f32

        if self.has_bias:
            b = jnp.asarray(bias, dtype=jnp.float32).reshape(1, N)
            if self.Np != N:
                b = jnp.pad(b, ((0, 0), (0, self.Np - N)))
            self.bias = jax.block_until_ready(b)                      # (1, Np) f32
        else:
            self.bias = None

    def __call__(self, x):
        orig_shape = x.shape
        K = orig_shape[-1]
        assert K == self.K, (orig_shape, self.K)
        x2 = x.reshape(-1, K)
        M = x2.shape[0]
        out_dtype = x.dtype

        # bf16 sublane packing: round the M tile to 16 (8 for 4-byte compute).
        sub = 16 if jnp.dtype(self.compute_dtype).itemsize == 2 else 8
        tm = min(self.tm, _round_up(M, sub))
        Mp = _round_up(M, tm)

        # Megacore (v7x = 2 TensorCores): guarantee >= 2 parallel grid blocks so a
        # single-M-block (decode-like) call still splits N across both cores.
        tn = self.tn
        while (Mp // tm) * (self.Np // tn) < 2 and tn % 256 == 0:
            tn //= 2
        tk = self.tk
        gm, gn, gk = Mp // tm, self.Np // tn, self.Kp // tk
        single_k = gk == 1

        # Cast activations in the wrapper only when the kernel re-reads them
        # (once per N tile); otherwise skip the extra HBM pass and cast in VMEM.
        xc = x2
        if x2.dtype != self.compute_dtype and gn > 1:
            xc = x2.astype(self.compute_dtype)
        if (Mp, self.Kp) != (M, K):
            xc = jnp.pad(xc, ((0, Mp - M), (0, self.Kp - K)))

        act_bytes = jnp.dtype(xc.dtype).itemsize
        out_bytes = jnp.dtype(out_dtype).itemsize

        inputs = [xc, self.w_t, self.scales]
        in_specs = [
            pl.BlockSpec((tm, tk), lambda i, j, k: (i, k)),   # activations (Mp, Kp)
            pl.BlockSpec((tk, tn), lambda i, j, k: (k, j)),   # int8 weights (Kp, Np)
            pl.BlockSpec((1, tn), lambda i, j, k: (0, j)),    # scales (1, Np)
        ]
        if self.has_bias:
            inputs.append(self.bias)
            in_specs.append(pl.BlockSpec((1, tn), lambda i, j, k: (0, j)))

        scratch = [] if single_k else [pltpu.VMEM((tm, tn), jnp.float32)]

        # Double-buffered working-set estimate -> explicit scoped VMEM limit.
        ws = (2 * tm * tk * act_bytes          # activation tiles
              + 2 * tk * tn                    # int8 weight tiles
              + 2 * tm * tn * out_bytes        # output tiles
              + (0 if single_k else tm * tn * 4)   # f32 accumulator
              + 2 * 2 * tn * 4)                # scales / bias rows
        vmem_limit = int(min(max(2 * ws, 32 << 20), _vmem_capacity_bytes() * 3 // 4))

        cost = pl.CostEstimate(
            flops=int(2 * Mp * self.Np * self.Kp),
            transcendentals=0,
            bytes_accessed=int(gn * Mp * self.Kp * act_bytes    # x re-read per N tile
                               + gm * self.Kp * self.Np         # int8 w re-read per M tile
                               + Mp * self.Np * out_bytes
                               + (8 if self.has_bias else 4) * self.Np),
        )

        out = pl.pallas_call(
            _make_kernel(self.has_bias, single_k, self.compute_dtype),
            out_shape=jax.ShapeDtypeStruct((Mp, self.Np), out_dtype),
            grid_spec=pltpu.PrefetchScalarGridSpec(
                num_scalar_prefetch=0,
                grid=(gm, gn, gk),
                in_specs=in_specs,
                out_specs=pl.BlockSpec((tm, tn), lambda i, j, k: (i, j)),
                scratch_shapes=scratch,
            ),
            compiler_params=pltpu.CompilerParams(
                dimension_semantics=("parallel", "parallel", "arbitrary"),
                vmem_limit_bytes=vmem_limit,
            ),
            cost_estimate=cost,
        )(*inputs)

        if (Mp, self.Np) != (M, self.N):
            out = out[:M, :self.N]
        return out.reshape(*orig_shape[:-1], self.N)


if __name__ == "__main__":
    key = jax.random.PRNGKey(0)
    k_w, k_s, k_b, k_x = jax.random.split(key, 4)

    # Small, deliberately non-tile-aligned shapes (exercise padding + leading dims).
    in_features = 200
    out_features = 320
    batch, seq = 4, 6

    # Deterministic synthetic parameters (mirrors W8A16LinearLayer.__init__).
    int8_weights = jax.random.randint(
        k_w, (out_features, in_features), -128, 127, dtype=jnp.int8)
    scales = jax.random.normal(k_s, (out_features,), dtype=jnp.float32)
    bias = jax.random.normal(k_b, (1, out_features), dtype=jnp.float32)
    x = jax.random.normal(k_x, (batch, seq, in_features), dtype=jnp.float32)

    # Pure-JAX f32 references.
    w_f32 = int8_weights.astype(jnp.float32)
    ref = jnp.einsum("bsk,nk->bsn", x, w_f32) * scales + bias
    ref_nb = jnp.einsum("bsk,nk->bsn", x, w_f32) * scales

    def check(out, ref_arr):
        assert out.shape == ref_arr.shape, (out.shape, ref_arr.shape)
        err = float(jnp.max(jnp.abs(out.astype(jnp.float32) - ref_arr)))
        tol = 1e-2 * float(jnp.max(jnp.abs(ref_arr))) + 1e-3   # bf16-activation tolerance
        assert err < tol, (err, tol)

    # Default (large) tiles: single K/N grid step at these small shapes (fast path,
    # no accumulator scratch).
    layer = W8A16Linear(int8_weights, scales, bias)
    out = jax.block_until_ready(layer(x))
    check(out, ref)

    # Small tiles: multi-step K reduction, multiple N tiles, f32 accumulator path,
    # megacore-split logic, and padded M/N/K.
    layer_small = W8A16Linear(int8_weights, scales, bias, tn=128, tk=128)
    out2 = jax.block_until_ready(layer_small(x))
    check(out2, ref)

    # No-bias variant (no zeros bias materialized / DMA'd).
    layer_nb = W8A16Linear(int8_weights, scales, None)
    out3 = jax.block_until_ready(layer_nb(x))
    check(out3, ref_nb)

    print("KERNEL_OK")
</pallas_src>

<mosaic_0001>
module attributes {stable_mosaic.version = 11 : i64} {
  func.func @kernel(%arg0: i32, %arg1: i32, %arg2: i32, %arg3: memref<32x256xf32, #tpu.memory_space<vmem>>, %arg4: memref<256x384xi8, #tpu.memory_space<vmem>>, %arg5: memref<1x384xf32, #tpu.memory_space<vmem>>, %arg6: memref<1x384xf32, #tpu.memory_space<vmem>>, %arg7: memref<32x384xf32, #tpu.memory_space<vmem>>) attributes {dimension_semantics = [#tpu.dimension_semantics<parallel>, #tpu.dimension_semantics<parallel>, #tpu.dimension_semantics<arbitrary>], iteration_bounds = array<i64: 1, 1, 1>, scalar_prefetch = 0 : i64, scratch_operands = 0 : i64, tpu.core_type = #tpu.core_type<tc>, window_params = [{transform_indices = @transform_0, window_bounds = array<i64: 32, 256>}, {transform_indices = @transform_1, window_bounds = array<i64: 256, 384>}, {transform_indices = @transform_2, window_bounds = array<i64: 1, 384>}, {transform_indices = @transform_3, window_bounds = array<i64: 1, 384>}, {transform_indices = @transform_4, window_bounds = array<i64: 32, 384>}]} {
    %c0 = arith.constant 0 : index
    %c0_0 = arith.constant 0 : index
    %0 = vector.load %arg3[%c0, %c0_0] : memref<32x256xf32, #tpu.memory_space<vmem>>, vector<32x256xf32>
    %1 = arith.truncf %0 : vector<32x256xf32> to vector<32x256xbf16>
    %c0_1 = arith.constant 0 : index
    %c0_2 = arith.constant 0 : index
    %2 = vector.load %arg4[%c0_1, %c0_2] : memref<256x384xi8, #tpu.memory_space<vmem>>, vector<256x384xi8>
    %3 = arith.sitofp %2 : vector<256x384xi8> to vector<256x384xbf16>
    %cst = arith.constant dense<0.000000e+00> : vector<32x384xf32>
    %4 = tpu.matmul %1, %3, %cst {dimension_numbers = #tpu.dot_dimension_numbers<[1], [0], [0], [1], [0, 0, 1, 1], [], []>} : vector<32x256xbf16>, vector<256x384xbf16>, vector<32x384xf32> -> vector<32x384xf32>
    %c0_3 = arith.constant 0 : index
    %c0_4 = arith.constant 0 : index
    %5 = vector.load %arg5[%c0_3, %c0_4] : memref<1x384xf32, #tpu.memory_space<vmem>>, vector<1x384xf32>
    %6 = vector.broadcast %5 : vector<1x384xf32> to vector<32x384xf32>
    %7 = arith.mulf %4, %6 : vector<32x384xf32>
    %c0_5 = arith.constant 0 : index
    %c0_6 = arith.constant 0 : index
    %8 = vector.load %arg6[%c0_5, %c0_6] : memref<1x384xf32, #tpu.memory_space<vmem>>, vector<1x384xf32>
    %9 = vector.broadcast %8 : vector<1x384xf32> to vector<32x384xf32>
    %10 = arith.addf %7, %9 : vector<32x384xf32>
    %c0_7 = arith.constant 0 : index
    %c0_8 = arith.constant 0 : index
    %11 = vector.load %arg7[%c0_7, %c0_8] : memref<32x384xf32, #tpu.memory_space<vmem>>, vector<32x384xf32>
    tpu.vector_store %arg7[%c0_7, %c0_8], %10 {strides = array<i32>} : memref<32x384xf32, #tpu.memory_space<vmem>>, vector<32x384xf32>,
    return
  }
  func.func @transform_0(%arg0: i32, %arg1: i32, %arg2: i32) -> (i32, i32) {
    %c0_i32 = arith.constant 0 : i32
    return %arg0, %arg2 : i32, i32
  }
  func.func @transform_1(%arg0: i32, %arg1: i32, %arg2: i32) -> (i32, i32) {
    %c0_i32 = arith.constant 0 : i32
    return %arg2, %arg1 : i32, i32
  }
  func.func @transform_2(%arg0: i32, %arg1: i32, %arg2: i32) -> (i32, i32) {
    %c0_i32 = arith.constant 0 : i32
    %c0_i32_0 = arith.constant 0 : i32
    return %c0_i32, %arg1 : i32, i32
  }
  func.func @transform_3(%arg0: i32, %arg1: i32, %arg2: i32) -> (i32, i32) {
    %c0_i32 = arith.constant 0 : i32
    %c0_i32_0 = arith.constant 0 : i32
    return %c0_i32, %arg1 : i32, i32
  }
  func.func @transform_4(%arg0: i32, %arg1: i32, %arg2: i32) -> (i32, i32) {
    %c0_i32 = arith.constant 0 : i32
    return %arg0, %arg1 : i32, i32
  }
}

</mosaic_0001>

<bundles_post_ra>
// kernel: tpu_custom_call.1
= control target key start
LH: loop header
LB: loop body
LE: loop exit
PB: predicated region body
PF: predicated region fallthrough
CT: control target
= control target key end

     0   :  { %9 = vsyncpa [#allocation3], 0  ;;  %s508_s0 = inlined_call_operand.hbm [shape: f32[32,256], index: 0, kind: input, shape index: {}]   ;;  %s509_s1 = inlined_call_operand.hbm [shape: s8[256,384], index: 1, kind: input, shape index: {}]   ;;  %s510_s2 = inlined_call_operand.vmem [shape: f32[1,384], index: 2, kind: input, shape index: {}]   ;;  %s511_s3 = inlined_call_operand.vmem [shape: f32[1,384], index: 3, kind: input, shape index: {}]   ;;  %s512_s4 = inlined_call_operand.hbm [shape: f32[32,384], index: 4, kind: output, shape index: {}]  }
   0x1   :  { %10 = vsyncpa [#allocation6], 0 }
   0x2   :  { %11 = vsyncpa [#allocation4], 0  ;;  %s428_s15 = smov [#allocation2]   ;;  %s356_s19 = scalar_lea.hbm %s508_s0, 1024 }
   0x3   :  { %s17_s16 = sshll.u32 %s428_s15, 4  ;;  %p357_p0 = scmp.ne.s32.totalorder %s508_s0, %s356_s19  ;;  %s18_s16 = int_to_ptr.vmem [resolvable:$true] %s17_s16 }
   0x4   :  { %p360_p1 = scmp.lt.u32.totalorder %s356_s19, %s508_s0 }
   0x6   :  { %p362_p2 = pnand %p360_p1, %p357_p0 }
   0x8   :  { %365 = shalt.err (!%p362_p2)
}
   0x9   :  { %s366_s24 = scalar_lea.vmem %s18_s16, 1024  ;;  %p371_p4 = scmp.lt.s32.totalorder %s18_s16, %s18_s16 }
   0xa   :  { %p367_p3 = scmp.ne.s32.totalorder %s18_s16, %s366_s24  ;;  %p372_p5 = scmp.lt.s32.totalorder %s366_s24, %s366_s24 }
   0xc   :  { %p373_p6 = por %p372_p5, %p371_p4 }
   0xe   :  { %p374_p7 = pnand %p373_p6, %p367_p3 }
  0x10   :  { %377 = shalt.err (!%p374_p7)
}
  0x11   :  { %s429_s25 = smov 256   ;;  %s430_s26 = smov 16  }
  0x12   :  { %23 = dma.hbm_to_vmem [thread:$0]  %s508_s0, 1024, %s18_s16, [#allocation3], %s429_s25, %s429_s25, %s430_s26  }
  0x13   :  { %s431_s29 = smov [#allocation5]   ;;  %s378_s7 = scalar_lea.hbm %s509_s1, 3072 }
  0x14   :  { %s29_s30 = sshll.u32 %s431_s29, 4  ;;  %p379_p8 = scmp.ne.s32.totalorder %s509_s1, %s378_s7  ;;  %s30_s30 = int_to_ptr.vmem [resolvable:$true] %s29_s30 }
  0x15   :  { %p382_p9 = scmp.lt.u32.totalorder %s378_s7, %s509_s1 }
  0x17   :  { %p384_p10 = pnand %p382_p9, %p379_p8 }
  0x19   :  { %387 = shalt.err (!%p384_p10)
}
  0x1a   :  { %s388_s12 = scalar_lea.vmem %s30_s30, 3072  ;;  %p393_p12 = scmp.lt.s32.totalorder %s30_s30, %s30_s30 }
  0x1b   :  { %p389_p11 = scmp.ne.s32.totalorder %s30_s30, %s388_s12  ;;  %p394_p13 = scmp.lt.s32.totalorder %s388_s12, %s388_s12 }
  0x1d   :  { %p395_p0 = por %p394_p13, %p393_p12 }
  0x1f   :  { %p396_p1 = pnand %p395_p0, %p389_p11 }
  0x21   :  { %399 = shalt.err (!%p396_p1)
}
  0x22   :  { %s432_s0 = smov 384   ;;  %s433_s13 = smov 24  }
  0x23   :  { %35 = dma.hbm_to_vmem [thread:$0]  %s509_s1, 3072, %s30_s30, [#allocation6], %s432_s0, %s432_s0, %s433_s13  }
  0x24   :  { %422 = dma.done.wait [#allocation3], 1024  }
  0x25   :  { %423 = vsyncadd [#allocation3], 4294966272 }
  0x26   :  { %424 = dma.done.wait [#allocation6], 3072  }
  0x27   :  { %425 = vsyncadd [#allocation6], 4294964224  ;;  %v60_v0 = vld [vmem:[#allocation5 + $0x8] sm:$0xff]  ;;  %v59_v1 = vld [vmem:[#allocation5] sm:$0xff] }
  0x28   :  { %v84_v2 = vunpack.c.l.s8.bf16 %v60_v0  ;;  %v87_v3 = vunpack.c.h.s8.bf16 %v60_v0  ;;  %v83_v4 = vunpack.c.l.s8.bf16 %v59_v1  ;;  %v63_v5 = vld [vmem:[#allocation5 + $0x20] sm:$0xff]  ;;  %v73_v6 = vld [vmem:[#allocation5 + $0x70] sm:$0xff]  ;;  %v86_v8 = vunpack.c.h.s8.bf16 %v59_v1  ;;  %v62_v12 = vld [vmem:[#allocation5 + $0x18] sm:$0xff] }
  0x29   :  { %v61_v7 = vld [vmem:[#allocation5 + $0x10] sm:$0xff]  ;;  %v109_v9 = vunpack.c.l.s8.bf16 %v73_v6  ;;  %v112_v10 = vunpack.c.h.s8.bf16 %v73_v6  ;;  %v90_v11 = vunpack.c.l.s8.bf16 %v63_v5  ;;  %v76_v14 = vld [vmem:[#allocation5 + $0x88] sm:$0xff]  ;;  %v89_v16 = vunpack.c.l.s8.bf16 %v62_v12  ;;  %v50_v21 = vld [vmem:[#allocation2 + $0x18] sm:$0xff] }
  0x2a   :  { %131 = vmatprep.subr.bf16.mxu0 %v84_v2  ;;  %v85_v13 = vunpack.c.l.s8.bf16 %v61_v7  ;;  %v88_v15 = vunpack.c.h.s8.bf16 %v61_v7  ;;  %v115_v17 = vunpack.c.l.s8.bf16 %v76_v14  ;;  %v64_v18 = vld [vmem:[#allocation5 + $0x28] sm:$0xff]  ;;  %v93_v19 = vunpack.c.h.s8.bf16 %v63_v5  ;;  %v66_v22 = vld [vmem:[#allocation5 + $0x38] sm:$0xff]  ;;  %v65_v28 = vld [vmem:[#allocation5 + $0x30] sm:$0xff] }
  0x2b   :  { %132 = vmatpush1.bf16.msra.mxu0 %v83_v4  ;;  %321 = vmatprep.subr.bf16.mxu1 %v109_v9  ;;  %v48_v20 = vld [vmem:[#allocation2 + $0x8] sm:$0xff]  ;;  %v91_v23 = vunpack.c.l.s8.bf16 %v64_v18  ;;  %v92_v24 = vunpack.c.h.s8.bf16 %v62_v12  ;;  %v118_v25 = vunpack.c.h.s8.bf16 %v76_v14  ;;  %v96_v27 = vunpack.c.l.s8.bf16 %v66_v22  ;;  %v79_v29 = vld [vmem:[#allocation5 + $0xa0] sm:$0xff]  ;;  %v69_v35 = vld [vmem:[#allocation5 + $0x50] sm:$0xff] }
  0x2c   :  { %133 = vmatprep.subr.bf16.mxu0 %v87_v3  ;;  %322 = vmatpush3.bf16.msra.mxu1 %v85_v13  ;;  %v56_v26 = vpack.c.bf16 %v50_v21, %v48_v20  ;;  %v94_v30 = vunpack.c.h.s8.bf16 %v64_v18  ;;  %v95_v31 = vunpack.c.l.s8.bf16 %v65_v28  ;;  %v121_v32 = vunpack.c.l.s8.bf16 %v79_v29  ;;  %v67_v33 = vld [vmem:[#allocation5 + $0x40] sm:$0xff]  ;;  %v68_v40 = vld [vmem:[#allocation5 + $0x48] sm:$0xff]  ;;  %v82_v41 = vld [vmem:[#allocation5 + $0xb8] sm:$0xff] }
  0x2d   :  { %323 = vmatprep.subr.bf16.mxu1 %v112_v10  ;;  %v99_v34 = vunpack.c.h.s8.bf16 %v66_v22  ;;  %v97_v36 = vunpack.c.l.s8.bf16 %v67_v33  ;;  %v98_v37 = vunpack.c.h.s8.bf16 %v65_v28  ;;  %v124_v38 = vunpack.c.h.s8.bf16 %v79_v29  ;;  %v70_v45 = vld [vmem:[#allocation5 + $0x58] sm:$0xff]  ;;  %v72_v47 = vld [vmem:[#allocation5 + $0x68] sm:$0xff]  ;;  %v71_v52 = vld [vmem:[#allocation5 + $0x60] sm:$0xff] }
  0x2e   :  { %216 = vmatprep.mubr.bf16.mxu1 %v56_v26  ;;  %163 = vmatprep.mubr.bf16.mxu0 %v56_v26  ;;  %v102_v39 = vunpack.c.l.s8.bf16 %v69_v35  ;;  %v100_v42 = vunpack.c.h.s8.bf16 %v67_v33  ;;  %v101_v43 = vunpack.c.l.s8.bf16 %v68_v40  ;;  %v127_v44 = vunpack.c.l.s8.bf16 %v82_v41  ;;  %v47_v54 = vld [vmem:[#allocation2] sm:$0xff]  ;;  %v49_v55 = vld [vmem:[#allocation2 + $0x10] sm:$0xff]  ;;  %v52_v57 = vld [vmem:[#allocation2 + $0x28] sm:$0xff] }
  0x2f   :  { %134 = vmatpush1.bf16.msra.mxu0 %v86_v8  ;;  %v105_v46 = vunpack.c.h.s8.bf16 %v69_v35  ;;  %v103_v48 = vunpack.c.l.s8.bf16 %v70_v45  ;;  %v104_v49 = vunpack.c.h.s8.bf16 %v68_v40  ;;  %v130_v50 = vunpack.c.h.s8.bf16 %v82_v41  ;;  %v54_v58 = vld [vmem:[#allocation2 + $0x38] sm:$0xff]  ;;  %v75_v60 = vld [vmem:[#allocation5 + $0x80] sm:$0xff]  ;;  %v53_v3 = vld [vmem:[#allocation2 + $0x30] sm:$0xff] }
  0x30   :  { %135 = vmatprep.subr.bf16.mxu0 %v90_v11  ;;  %324 = vmatpush3.bf16.msra.mxu1 %v88_v15  ;;  %v108_v51 = vunpack.c.l.s8.bf16 %v72_v47  ;;  %v106_v53 = vunpack.c.h.s8.bf16 %v70_v45  ;;  %v107_v56 = vunpack.c.l.s8.bf16 %v71_v52  ;;  %v111_v59 = vunpack.c.h.s8.bf16 %v72_v47  ;;  %v74_v1 = vld [vmem:[#allocation5 + $0x78] sm:$0xff]  ;;  %v51_v2 = vld [vmem:[#allocation2 + $0x20] sm:$0xff]  ;;  %v77_v10 = vld [vmem:[#allocation5 + $0x90] sm:$0xff] }
  0x31   :  { %325 = vmatprep.subr.bf16.mxu1 %v115_v17  ;;  %v55_v61 = vpack.c.bf16 %v49_v55, %v47_v54  ;;  %v58_v62 = vpack.c.bf16 %v54_v58, %v52_v57  ;;  %v110_v63 = vunpack.c.h.s8.bf16 %v71_v52  ;;  %v114_v0 = vunpack.c.l.s8.bf16 %v75_v60  ;;  %v78_v6 = vld [vmem:[#allocation5 + $0x98] sm:$0xff]  ;;  %v81_v13 = vld [vmem:[#allocation5 + $0xb0] sm:$0xff] }
  0x32   :  { %v113_v4 = vunpack.c.l.s8.bf16 %v74_v1  ;;  %v117_v5 = vunpack.c.h.s8.bf16 %v75_v60  ;;  %v57_v7 = vpack.c.bf16 %v53_v3, %v51_v2  ;;  %v116_v8 = vunpack.c.h.s8.bf16 %v74_v1 }
  0x33   :  { %136 = vmatpush1.bf16.msra.mxu0 %v89_v16  ;;  %v120_v9 = vunpack.c.l.s8.bf16 %v78_v6  ;;  %v119_v11 = vunpack.c.l.s8.bf16 %v77_v10  ;;  %v123_v12 = vunpack.c.h.s8.bf16 %v78_v6  ;;  %v122_v14 = vunpack.c.h.s8.bf16 %v77_v10  ;;  %v80_v16 = vld [vmem:[#allocation5 + $0xa8] sm:$0xff] }
  0x34   :  { %137 = vmatprep.subr.bf16.mxu0 %v93_v19  ;;  %326 = vmatpush3.bf16.msra.mxu1 %v91_v23  ;;  %v126_v15 = vunpack.c.l.s8.bf16 %v81_v13  ;;  %v125_v17 = vunpack.c.l.s8.bf16 %v80_v16  ;;  %v129_v18 = vunpack.c.h.s8.bf16 %v81_v13  ;;  %v128_v19 = vunpack.c.h.s8.bf16 %v80_v16  ;;  %v233_v23 = vld [vmem:[%s510_s2] sm:$0x7]  ;;  %s434_s2 = smov [#allocation7]  }
  0x35   :  { %327 = vmatprep.subr.bf16.mxu1 %v118_v25  ;;  %v235_v20 = vlaneseq }
  0x37   :  { %138 = vmatpush1.bf16.msra.mxu0 %v92_v24  ;;  %v236_v21 = vshrl.u32 %v235_v20, 7  ;;  %v262_v24 = vld [vmem:[%s511_s3] sm:$0x7]  ;;  %s308_s3 = sshll.u32 %s434_s2, 4  ;;  %s309_s3 = int_to_ptr.vmem [resolvable:$true] %s308_s3 }
  0x38   :  { %139 = vmatprep.subr.bf16.mxu0 %v96_v27  ;;  %328 = vmatpush3.bf16.msra.mxu1 %v94_v30  ;;  %s400_s19 = scalar_lea.vmem %s309_s3, 1536  ;;  %p405_p3 = scmp.lt.s32.totalorder %s309_s3, %s309_s3 }
  0x39   :  { %329 = vmatprep.subr.bf16.mxu1 %v121_v32  ;;  %v245_v22 = vsub.s32 2, %v236_v21  ;;  %v237_v47 = vsub.s32 0, %v236_v21  ;;  %p401_p2 = scmp.ne.s32.totalorder %s309_s3, %s400_s19  ;;  %p406_p4 = scmp.lt.s32.totalorder %s400_s19, %s400_s19 }
  0x3b   :  { %140 = vmatpush1.bf16.msra.mxu0 %v95_v31  ;;  %v246_v26 = vrot.slane %v233_v23, %v245_v22  ;;  %v275_v29 = vrot.slane %v262_v24, %v245_v22  ;;  %p407_p5 = por %p406_p4, %p405_p3 }
  0x3c   :  { %141 = vmatprep.subr.bf16.mxu0 %v99_v34  ;;  %330 = vmatpush3.bf16.msra.mxu1 %v97_v36 }
  0x3d   :  { %331 = vmatprep.subr.bf16.mxu1 %v124_v38  ;;  %p408_p6 = pnand %p407_p5, %p401_p2 }
  0x3f   :  { %142 = vmatpush1.bf16.msra.mxu0 %v98_v37 }
  0x40   :  { %143 = vmatprep.subr.bf16.mxu0 %v102_v39  ;;  %332 = vmatpush3.bf16.msra.mxu1 %v100_v42 }
  0x41   :  { %333 = vmatprep.subr.bf16.mxu1 %v127_v44 }
  0x43   :  { %144 = vmatpush1.bf16.msra.mxu0 %v101_v43 }
  0x44   :  { %145 = vmatprep.subr.bf16.mxu0 %v105_v46  ;;  %334 = vmatpush3.bf16.msra.mxu1 %v103_v48  ;;  %v241_v48 = vsub.s32 1, %v236_v21 }
  0x45   :  { %335 = vmatprep.subr.bf16.mxu1 %v130_v50 }
  0x46   :  { %v242_v50 = vrot.slane %v233_v23, %v241_v48 }
  0x47   :  { %146 = vmatpush1.bf16.msra.mxu0 %v104_v49  ;;  %v238_v49 = vrot.slane %v233_v23, %v237_v47 }
  0x48   :  { %147 = vmatprep.subr.bf16.mxu0 %v108_v51  ;;  %336 = vmatpush3.bf16.msra.mxu1 %v106_v53  ;;  %v267_v51 = vrot.slane %v262_v24, %v237_v47  ;;  %v271_v53 = vrot.slane %v262_v24, %v241_v48 }
  0x4b   :  { %148 = vmatpush1.bf16.msra.mxu0 %v107_v56  ;;  %217 = vmatmul.mubr.bf16.vlgmr.msra.gmra.mrb[0].mxu1 %v55_v61 }
  0x4c   :  { %149 = vmatprep.subr.bf16.mxu0 %v111_v59  ;;  %224 = vmatprep.mubr.bf16.mxu1 %v58_v62 }
  0x4f   :  { %150 = vmatpush1.bf16.msra.mxu0 %v110_v63 }
  0x50   :  { %151 = vmatprep.subr.bf16.mxu0 %v114_v0 }
  0x53   :  { %152 = vmatpush1.bf16.msra.mxu0 %v113_v4  ;;  %225 = vmatmul.mubr.bf16.gmra.mrb[4].mxu1 %v57_v7 }
  0x54   :  { %153 = vmatprep.subr.bf16.mxu0 %v117_v5 }
  0x57   :  { %154 = vmatpush1.bf16.msra.mxu0 %v116_v8 }
  0x58   :  { %155 = vmatprep.subr.bf16.mxu0 %v120_v9 }
  0x5b   :  { %156 = vmatpush1.bf16.msra.mxu0 %v119_v11 }
  0x5c   :  { %157 = vmatprep.subr.bf16.mxu0 %v123_v12 }
  0x5f   :  { %158 = vmatpush1.bf16.msra.mxu0 %v122_v14 }
  0x60   :  { %159 = vmatprep.subr.bf16.mxu0 %v126_v15 }
  0x63   :  { %160 = vmatpush1.bf16.msra.mxu0 %v125_v17 }
  0x64   :  { %161 = vmatprep.subr.bf16.mxu0 %v129_v18 }
  0x67   :  { %162 = vmatpush1.bf16.msra.mxu0 %v128_v19 }
  0x6a   :  { %164 = vmatmul.mubr.bf16.vlgmr.msra.gmra.mrb[0].mxu0 %v55_v61 }
  0x6b   :  { %173 = vmatprep.mubr.bf16.mxu0 %v58_v62 }
  0x72   :  { %174 = vmatmul.mubr.bf16.gmra.mrb[4].mxu0 %v57_v7 }
 0x11e   :  { %v337_v25 = vpop.f32.mrb[0].mxu1 }
 0x11f   :  { %v338_v27 = vpop.f32.mrb[1].mxu1 }
 0x120   :  { %v339_v28 = vadd.f32 %v338_v27, %v337_v25  ;;  %v340_v30 = vpop.f32.mrb[2].mxu1 }
 0x121   :  { %v341_v31 = vpop.f32.mrb[3].mxu1 }
 0x122   :  { %v252_v32 = vmul.f32 %v339_v28, %v246_v26  ;;  %v342_v33 = vadd.f32 %v341_v31, %v340_v30 }
 0x124   :  { %v281_v34 = vadd.f32 %v275_v29, %v252_v32  ;;  %v255_v35 = vmul.f32 %v342_v33, %v246_v26 }
 0x126   :  { %293 = vst [vmem:[#allocation7 + $0x10] sm:$0xff] %v281_v34  ;;  %v284_v36 = vadd.f32 %v275_v29, %v255_v35  ;;  %v343_v37 = vpop.f32.mrb[4].mxu1 }
 0x127   :  { %v344_v38 = vpop.f32.mrb[5].mxu1 }
 0x128   :  { %296 = vst [vmem:[#allocation7 + $0x28] sm:$0xff] %v284_v36  ;;  %v345_v39 = vadd.f32 %v344_v38, %v343_v37  ;;  %v346_v40 = vpop.f32.mrb[6].mxu1 }
 0x129   :  { %v347_v41 = vpop.f32.mrb[7].mxu1 }
 0x12a   :  { %v258_v42 = vmul.f32 %v345_v39, %v246_v26  ;;  %v348_v43 = vadd.f32 %v347_v41, %v346_v40 }
 0x12c   :  { %v287_v44 = vadd.f32 %v275_v29, %v258_v42  ;;  %v261_v45 = vmul.f32 %v348_v43, %v246_v26 }
 0x12e   :  { %299 = vst [vmem:[#allocation7 + $0x40] sm:$0xff] %v287_v44  ;;  %v290_v46 = vadd.f32 %v275_v29, %v261_v45 }
 0x130   :  { %302 = vst [vmem:[#allocation7 + $0x58] sm:$0xff] %v290_v46 }
 0x13d   :  { %v165_v52 = vpop.f32.mrb[0].mxu0 }
 0x13e   :  { %v250_v54 = vmul.f32 %v238_v49, %v165_v52  ;;  %v167_v55 = vpop.f32.mrb[1].mxu0 }
 0x13f   :  { %v251_v56 = vmul.f32 %v242_v50, %v167_v55  ;;  %v169_v57 = vpop.f32.mrb[2].mxu0 }
 0x140   :  { %v279_v58 = vadd.f32 %v267_v51, %v250_v54  ;;  %v253_v59 = vmul.f32 %v238_v49, %v169_v57  ;;  %v171_v60 = vpop.f32.mrb[3].mxu0 }
 0x141   :  { %v280_v61 = vadd.f32 %v271_v53, %v251_v56  ;;  %v254_v62 = vmul.f32 %v242_v50, %v171_v60 }
 0x142   :  { %291 = vst [vmem:[#allocation7] sm:$0xff] %v279_v58  ;;  %v282_v63 = vadd.f32 %v267_v51, %v253_v59 }
 0x143   :  { %292 = vst [vmem:[#allocation7 + $0x8] sm:$0xff] %v280_v61  ;;  %v283_v0 = vadd.f32 %v271_v53, %v254_v62 }
 0x144   :  { %294 = vst [vmem:[#allocation7 + $0x18] sm:$0xff] %v282_v63 }
 0x145   :  { %295 = vst [vmem:[#allocation7 + $0x20] sm:$0xff] %v283_v0  ;;  %v175_v1 = vpop.f32.mrb[4].mxu0 }
 0x146   :  { %v256_v2 = vmul.f32 %v238_v49, %v175_v1  ;;  %v177_v3 = vpop.f32.mrb[5].mxu0 }
 0x147   :  { %v257_v4 = vmul.f32 %v242_v50, %v177_v3  ;;  %v179_v5 = vpop.f32.mrb[6].mxu0 }
 0x148   :  { %v285_v6 = vadd.f32 %v267_v51, %v256_v2  ;;  %v259_v7 = vmul.f32 %v238_v49, %v179_v5  ;;  %v181_v8 = vpop.f32.mrb[7].mxu0 }
 0x149   :  { %v286_v9 = vadd.f32 %v271_v53, %v257_v4  ;;  %v260_v10 = vmul.f32 %v242_v50, %v181_v8 }
 0x14a   :  { %297 = vst [vmem:[#allocation7 + $0x30] sm:$0xff] %v285_v6  ;;  %v288_v11 = vadd.f32 %v267_v51, %v259_v7 }
 0x14b   :  { %298 = vst [vmem:[#allocation7 + $0x38] sm:$0xff] %v286_v9  ;;  %v289_v12 = vadd.f32 %v271_v53, %v260_v10 }
 0x14c   :  { %300 = vst [vmem:[#allocation7 + $0x48] sm:$0xff] %v288_v11 }
 0x14d   :  { %301 = vst [vmem:[#allocation7 + $0x50] sm:$0xff] %v289_v12 }
 0x14e   :  { %411 = shalt.err (!%p408_p6)
}
 0x14f   :  { %s412_s22 = scalar_lea.hbm %s512_s4, 1536 }
 0x150   :  { %p413_p7 = scmp.ne.s32.totalorder %s512_s4, %s412_s22  ;;  %p416_p8 = scmp.lt.u32.totalorder %s412_s22, %s512_s4 }
 0x152   :  { %p418_p9 = pnand %p416_p8, %p413_p7 }
 0x154   :  { %421 = shalt.err (!%p418_p9)
}
 0x155   :  { %314 = dma.vmem_to_hbm [thread:$0]  %s309_s3, 1536, %s512_s4, [#allocation4], %s432_s0, %s432_s0, %s433_s13  }
 0x156   :  { %426 = dma.done.wait [#allocation4], 1536  }
 0x157   :  { %427 = vsyncadd [#allocation4], 4294965760 }
 0x158   :  { %318 = vsyncpa [#allocation3], 1 }
 0x159   :  { %319 = vsyncpa [#allocation6], 1 }
 0x15a   :  { %320 = vsyncpa [#allocation4], 1 }

</bundles_post_ra>
